<compile_context>
chip_gen: v7x
topology: tpu7x:2x2x1
jax: 0.10.0
libtpu: 0.0.40
codegen_flags: <defaults>
</compile_context>

<pallas_src>
import functools

import jax
import jax.numpy as jnp
from jax.experimental import pallas as pl
from jax.experimental.pallas import tpu as pltpu


def _vae_encoder_kernel(x_ref, w1_ref, b1_ref, wms_ref, bms_ref, out_ref, *,
                        exp_dtype):
    # fcEn1: [TILE_B, x_dim] @ [x_dim, h_dim] (f32 accumulate) + bias.
    h = jnp.dot(x_ref[...], w1_ref[...],
                preferred_element_type=jnp.float32) + b1_ref[...]

    # Numerically-stable softmax over the feature (lane) axis.
    # max/sum and the final scale stay f32; exp optionally runs in bf16
    # (bf16 EUP on v6e/v7x ~2x exp throughput).
    h = h - jnp.max(h, axis=-1, keepdims=True)
    e = jnp.exp(h.astype(exp_dtype)).astype(jnp.float32)
    inv_sum = pl.reciprocal(jnp.sum(e, axis=-1, keepdims=True), approx=True)
    en1 = e * inv_sum

    # Fused fcMiu|fcSigma: one lane-dense [TILE_B, 2*z_dim] matmul + bias.
    out = jnp.dot(en1.astype(wms_ref.dtype), wms_ref[...],
                  preferred_element_type=jnp.float32) + bms_ref[...]
    out_ref[...] = out.astype(out_ref.dtype)


def prepare_encoder_params(w1, b1, wm, bm, ws, bs, *, mm_dtype=jnp.bfloat16):
    """One-time (per model) layout/dtype prep: keep out of the per-call hot path.

    w1: [h_dim, x_dim], b1: [h_dim]          (PyTorch nn.Linear layout)
    wm,ws: [z_dim, h_dim], bm,bs: [z_dim]
    """
    z_dim = wm.shape[0]
    two_z = 2 * z_dim

    w1_t = jnp.asarray(w1).T.astype(mm_dtype)                       # [x_dim, h_dim]
    b1_r = jnp.asarray(b1).reshape(1, -1).astype(jnp.float32)       # [1, h_dim]

    wms = jnp.concatenate([jnp.asarray(wm).T, jnp.asarray(ws).T], axis=1)
    bms = jnp.concatenate([jnp.asarray(bm), jnp.asarray(bs)])
    # Keep the fused output lane-dense: pad 2*z_dim up to a multiple of 128 so
    # the output write-back stays unmasked full-lane vst.
    two_z_pad = max(128, pl.cdiv(two_z, 128) * 128)
    if two_z_pad != two_z:
        wms = jnp.pad(wms, ((0, 0), (0, two_z_pad - two_z)))
        bms = jnp.pad(bms, (0, two_z_pad - two_z))
    wms_t = wms.astype(mm_dtype)                                     # [h_dim, 2z_pad]
    bms_r = bms.reshape(1, -1).astype(jnp.float32)                   # [1, 2z_pad]

    return {"w1": w1_t, "b1": b1_r, "wms": wms_t, "bms": bms_r, "z_dim": z_dim}


def vae_encoder(data, params, *, tile_b=512, bf16_exp=False):
    """VAEencoder.forward(data, bn=False) as one Pallas kernel.

    data:   [B, x_dim] float32 (cast to the matmul dtype at the call boundary).
    params: output of prepare_encoder_params().
    Returns (miu, sigma), each [B, z_dim] float32.
    """
    w1_t, b1_r, wms_t, bms_r = params["w1"], params["b1"], params["wms"], params["bms"]
    z_dim = params["z_dim"]

    B, x_dim = data.shape
    h_dim = w1_t.shape[1]
    two_z = wms_t.shape[1]
    mm_dtype = w1_t.dtype
    itemsize = jnp.dtype(mm_dtype).itemsize

    # Tile selection: multiple of 8 rows, aim for >= 2 grid steps (v7x has two
    # TensorCores), never larger than the (8-row rounded) half-batch.
    tile_b = max(8, (int(tile_b) // 8) * 8)
    half_b = max(8, ((B + 15) // 16) * 8)       # ~ceil(B/2) rounded to mult of 8
    tile_b = min(tile_b, half_b)
    n_tiles = pl.cdiv(B, tile_b)
    B_pad = n_tiles * tile_b

    # Data cast at the boundary; allow_input_fusion lets XLA fuse the convert
    # into the pallas_call input instead of a separate HBM round trip.
    x = data.astype(mm_dtype)
    if B_pad != B:
        # Cold path: only when B is not divisible by the chosen tile. The extra
        # rows are garbage and are discarded by the [:B] slice below.
        x = jnp.pad(x, ((0, B_pad - B), (0, 0)))

    cost = pl.CostEstimate(
        flops=2 * B_pad * (x_dim * h_dim + h_dim * two_z),
        transcendentals=B_pad * (h_dim + 1),               # exp + reciprocal
        bytes_accessed=(B_pad * x_dim * itemsize           # data in
                        + x_dim * h_dim * itemsize         # W1
                        + h_dim * two_z * itemsize         # Wmiu|Wsigma
                        + (h_dim + two_z) * 4              # biases
                        + B_pad * two_z * 4),              # fused output
    )

    # VMEM budget: double-buffered data/out tiles + resident weights/biases +
    # f32 softmax intermediates.  Only raise the scoped limit when the estimate
    # exceeds v5e's 16 MiB default (not hit at these shapes).
    vmem_est = (2 * tile_b * x_dim * itemsize
                + 2 * tile_b * two_z * 4
                + (x_dim * h_dim + h_dim * two_z) * itemsize
                + (h_dim + two_z) * 4 * 8
                + 4 * tile_b * h_dim * 4)
    cp_kwargs = dict(
        dimension_semantics=("parallel",),
        allow_input_fusion=[True, False, False, False, False],
    )
    if vmem_est > 14 * 1024 * 1024:
        cp_kwargs["vmem_limit_bytes"] = int(min(2 * vmem_est, 100 * 1024 * 1024))

    kernel = functools.partial(
        _vae_encoder_kernel,
        exp_dtype=jnp.bfloat16 if bf16_exp else jnp.float32)

    out = pl.pallas_call(
        kernel,
        out_shape=jax.ShapeDtypeStruct((B_pad, two_z), jnp.float32),
        grid_spec=pltpu.PrefetchScalarGridSpec(
            num_scalar_prefetch=0,
            grid=(n_tiles,),
            in_specs=[
                pl.BlockSpec((tile_b, x_dim), lambda i: (i, 0)),   # data tile
                pl.BlockSpec((x_dim, h_dim), lambda i: (0, 0)),    # W1 (resident)
                pl.BlockSpec((1, h_dim), lambda i: (0, 0)),        # b1
                pl.BlockSpec((h_dim, two_z), lambda i: (0, 0)),    # Wmiu|Wsigma
                pl.BlockSpec((1, two_z), lambda i: (0, 0)),        # bmiu|bsigma
            ],
            out_specs=pl.BlockSpec((tile_b, two_z), lambda i: (i, 0)),
        ),
        compiler_params=pltpu.CompilerParams(**cp_kwargs),
        cost_estimate=cost,
    )(x, w1_t, b1_r, wms_t, bms_r)

    miu = out[:B, :z_dim]
    sigma = out[:B, z_dim:2 * z_dim]
    return miu, sigma


def make_params(key, x_dim, h_dim, z_dim):
    """Deterministic synthetic parameters (PyTorch Linear layer shapes)."""
    k1, k2, k3, k4, k5, k6 = jax.random.split(key, 6)
    w1 = jax.random.normal(k1, (h_dim, x_dim), jnp.float32) * (1.0 / x_dim ** 0.5)
    b1 = jax.random.normal(k2, (h_dim,), jnp.float32) * 0.01
    wm = jax.random.normal(k3, (z_dim, h_dim), jnp.float32) * (1.0 / h_dim ** 0.5)
    bm = jax.random.normal(k4, (z_dim,), jnp.float32) * 0.01
    ws = jax.random.normal(k5, (z_dim, h_dim), jnp.float32) * (1.0 / h_dim ** 0.5)
    bs = jax.random.normal(k6, (z_dim,), jnp.float32) * 0.01
    return w1, b1, wm, bm, ws, bs


def reference_forward(data, w1, b1, wm, bm, ws, bs):
    en1 = jax.nn.softmax(data @ w1.T + b1, axis=-1)
    return en1 @ wm.T + bm, en1 @ ws.T + bs


if __name__ == "__main__":
    # Small shapes consistent with the module (bag-of-words style input),
    # with enough batch rows to exercise a 2-step grid.
    B, x_dim, h_dim, z_dim = 256, 256, 128, 64

    key = jax.random.PRNGKey(0)
    kx, kp = jax.random.split(key)
    data = jax.random.normal(kx, (B, x_dim), jnp.float32)
    w1, b1, wm, bm, ws, bs = make_params(kp, x_dim, h_dim, z_dim)

    miu_ref, sigma_ref = reference_forward(data, w1, b1, wm, bm, ws, bs)

    # Default fast path: bf16 MXU inputs + bf16 EUP exp, f32 accumulation,
    # approx EUP reciprocal.  Tolerance bounded by bf16 input rounding.
    params_bf16 = prepare_encoder_params(w1, b1, wm, bm, ws, bs,
                                         mm_dtype=jnp.bfloat16)
    miu, sigma = vae_encoder(data, params_bf16, tile_b=512, bf16_exp=True)
    jax.block_until_ready((miu, sigma))
    assert miu.shape == (B, z_dim) and sigma.shape == (B, z_dim)
    assert jnp.allclose(miu, miu_ref, atol=3e-2, rtol=3e-2)
    assert jnp.allclose(sigma, sigma_ref, atol=3e-2, rtol=3e-2)

    # f32 matmul-input path (tighter check; tolerance loosened from 2e-5 to
    # 2e-3 because of the approx EUP reciprocal in the softmax).
    params_f32 = prepare_encoder_params(w1, b1, wm, bm, ws, bs,
                                        mm_dtype=jnp.float32)
    miu32, sigma32 = vae_encoder(data, params_f32, tile_b=512, bf16_exp=False)
    jax.block_until_ready((miu32, sigma32))
    assert jnp.allclose(miu32, miu_ref, atol=2e-3, rtol=2e-3)
    assert jnp.allclose(sigma32, sigma_ref, atol=2e-3, rtol=2e-3)

    print("KERNEL_OK")
</pallas_src>

<mosaic_0001>
module attributes {stable_mosaic.version = 11 : i64} {
  func.func @_vae_encoder_kernel(%arg0: i32, %arg1: memref<128x256xbf16, #tpu.memory_space<vmem>>, %arg2: memref<256x128xbf16, #tpu.memory_space<vmem>>, %arg3: memref<1x128xf32, #tpu.memory_space<vmem>>, %arg4: memref<128x128xbf16, #tpu.memory_space<vmem>>, %arg5: memref<1x128xf32, #tpu.memory_space<vmem>>, %arg6: memref<128x128xf32, #tpu.memory_space<vmem>>) attributes {dimension_semantics = [#tpu.dimension_semantics<parallel>], iteration_bounds = array<i64: 2>, scalar_prefetch = 0 : i64, scratch_operands = 0 : i64, tpu.core_type = #tpu.core_type<tc>, window_params = [{transform_indices = @transform_0, window_bounds = array<i64: 128, 256>}, {pipeline_mode = #tpu.pipeline_mode<synchronous>, transform_indices = @transform_1, window_bounds = array<i64: 256, 128>}, {pipeline_mode = #tpu.pipeline_mode<synchronous>, transform_indices = @transform_2, window_bounds = array<i64: 1, 128>}, {pipeline_mode = #tpu.pipeline_mode<synchronous>, transform_indices = @transform_3, window_bounds = array<i64: 128, 128>}, {pipeline_mode = #tpu.pipeline_mode<synchronous>, transform_indices = @transform_4, window_bounds = array<i64: 1, 128>}, {transform_indices = @transform_5, window_bounds = array<i64: 128, 128>}]} {
    %c0 = arith.constant 0 : index
    %c0_0 = arith.constant 0 : index
    %0 = vector.load %arg1[%c0, %c0_0] : memref<128x256xbf16, #tpu.memory_space<vmem>>, vector<128x256xbf16>
    %c0_1 = arith.constant 0 : index
    %c0_2 = arith.constant 0 : index
    %1 = vector.load %arg2[%c0_1, %c0_2] : memref<256x128xbf16, #tpu.memory_space<vmem>>, vector<256x128xbf16>
    %cst = arith.constant dense<0.000000e+00> : vector<128x128xf32>
    %2 = tpu.matmul %0, %1, %cst {dimension_numbers = #tpu.dot_dimension_numbers<[1], [0], [0], [1], [0, 0, 1, 1], [], []>} : vector<128x256xbf16>, vector<256x128xbf16>, vector<128x128xf32> -> vector<128x128xf32>
    %c0_3 = arith.constant 0 : index
    %c0_4 = arith.constant 0 : index
    %3 = vector.load %arg3[%c0_3, %c0_4] : memref<1x128xf32, #tpu.memory_space<vmem>>, vector<1x128xf32>
    %4 = vector.broadcast %3 : vector<1x128xf32> to vector<128x128xf32>
    %5 = arith.addf %2, %4 : vector<128x128xf32>
    %cst_5 = arith.constant dense<0xFF800000> : vector<128xf32>
    %6 = vector.multi_reduction <maximumf>, %5, %cst_5 [1] : vector<128x128xf32> to vector<128xf32>
    %7 = vector.shape_cast %6 : vector<128xf32> to vector<128x1xf32>
    %8 = vector.broadcast %7 : vector<128x1xf32> to vector<128x128xf32>
    %9 = arith.subf %5, %8 : vector<128x128xf32>
    %10 = arith.truncf %9 : vector<128x128xf32> to vector<128x128xbf16>
    %11 = math.exp %10 : vector<128x128xbf16>
    %12 = arith.extf %11 : vector<128x128xbf16> to vector<128x128xf32>
    %cst_6 = arith.constant dense<0.000000e+00> : vector<128xf32>
    %13 = vector.multi_reduction <add>, %12, %cst_6 [1] : vector<128x128xf32> to vector<128xf32>
    %14 = vector.shape_cast %13 : vector<128xf32> to vector<128x1xf32>
    %15 = tpu.reciprocal %14 {approx = true} : vector<128x1xf32> -> vector<128x1xf32>
    %16 = vector.broadcast %15 : vector<128x1xf32> to vector<128x128xf32>
    %17 = arith.mulf %12, %16 : vector<128x128xf32>
    %18 = arith.truncf %17 : vector<128x128xf32> to vector<128x128xbf16>
    %c0_7 = arith.constant 0 : index
    %c0_8 = arith.constant 0 : index
    %19 = vector.load %arg4[%c0_7, %c0_8] : memref<128x128xbf16, #tpu.memory_space<vmem>>, vector<128x128xbf16>
    %cst_9 = arith.constant dense<0.000000e+00> : vector<128x128xf32>
    %20 = tpu.matmul %18, %19, %cst_9 {dimension_numbers = #tpu.dot_dimension_numbers<[1], [0], [0], [1], [0, 0, 1, 1], [], []>} : vector<128x128xbf16>, vector<128x128xbf16>, vector<128x128xf32> -> vector<128x128xf32>
    %c0_10 = arith.constant 0 : index
    %c0_11 = arith.constant 0 : index
    %21 = vector.load %arg5[%c0_10, %c0_11] : memref<1x128xf32, #tpu.memory_space<vmem>>, vector<1x128xf32>
    %22 = vector.broadcast %21 : vector<1x128xf32> to vector<128x128xf32>
    %23 = arith.addf %20, %22 : vector<128x128xf32>
    %c0_12 = arith.constant 0 : index
    %c0_13 = arith.constant 0 : index
    %24 = vector.load %arg6[%c0_12, %c0_13] : memref<128x128xf32, #tpu.memory_space<vmem>>, vector<128x128xf32>
    tpu.vector_store %arg6[%c0_12, %c0_13], %23 {strides = array<i32>} : memref<128x128xf32, #tpu.memory_space<vmem>>, vector<128x128xf32>,
    return
  }
  func.func @transform_0(%arg0: i32) -> (i32, i32) {
    %c0_i32 = arith.constant 0 : i32
    %c0_i32_0 = arith.constant 0 : i32
    return %arg0, %c0_i32 : i32, i32
  }
  func.func @transform_1(%arg0: i32) -> (i32, i32) {
    %c0_i32 = arith.constant 0 : i32
    %c0_i32_0 = arith.constant 0 : i32
    %c0_i32_1 = arith.constant 0 : i32
    return %c0_i32, %c0_i32_0 : i32, i32
  }
  func.func @transform_2(%arg0: i32) -> (i32, i32) {
    %c0_i32 = arith.constant 0 : i32
    %c0_i32_0 = arith.constant 0 : i32
    %c0_i32_1 = arith.constant 0 : i32
    return %c0_i32, %c0_i32_0 : i32, i32
  }
  func.func @transform_3(%arg0: i32) -> (i32, i32) {
    %c0_i32 = arith.constant 0 : i32
    %c0_i32_0 = arith.constant 0 : i32
    %c0_i32_1 = arith.constant 0 : i32
    return %c0_i32, %c0_i32_0 : i32, i32
  }
  func.func @transform_4(%arg0: i32) -> (i32, i32) {
    %c0_i32 = arith.constant 0 : i32
    %c0_i32_0 = arith.constant 0 : i32
    %c0_i32_1 = arith.constant 0 : i32
    return %c0_i32, %c0_i32_0 : i32, i32
  }
  func.func @transform_5(%arg0: i32) -> (i32, i32) {
    %c0_i32 = arith.constant 0 : i32
    %c0_i32_0 = arith.constant 0 : i32
    return %arg0, %c0_i32 : i32, i32
  }
}

</mosaic_0001>

<bundles_post_ra>
// kernel: tpu_custom_call.1
= control target key start
LH: loop header
LB: loop body
LE: loop exit
PB: predicated region body
PF: predicated region fallthrough
CT: control target
= control target key end

     0   :  { %10 = vsyncpa [#allocation3], 0  ;;  %s2064_s0 = inlined_call_operand.hbm [shape: bf16[256,256], index: 0, kind: input, shape index: {}]   ;;  %s2065_s1 = inlined_call_operand.hbm [shape: bf16[256,128], index: 1, kind: input, shape index: {}]   ;;  %s2066_s2 = inlined_call_operand.vmem [shape: f32[1,128], index: 2, kind: input, shape index: {}]   ;;  %s2067_s3 = inlined_call_operand.hbm [shape: bf16[128,128], index: 3, kind: input, shape index: {}]   ;;  %s2068_s4 = inlined_call_operand.vmem [shape: f32[1,128], index: 4, kind: input, shape index: {}]   ;;  %s2069_s5 = inlined_call_operand.hbm [shape: f32[256,128], index: 5, kind: output, shape index: {}]  }
   0x1   :  { %12 = vsyncpa [#allocation3 + $0x1], 0 }
   0x2   :  { %13 = vsyncpa [#allocation6], 0 }
   0x3   :  { %14 = vsyncpa [#allocation4], 0 }
   0x4   :  { %16 = vsyncpa [#allocation4 + $0x1], 0  ;;  %s1605_s18 = smov 0   ;;  %s1607_s19 = smov 0  }
   0x5   :  { %s1609_s20 = smov 0   ;;  %s1611_s21 = smov 0  }
   0x6 LB: > { %s1626_s22 = sadd.s32 4294967295, %s1563_s21   ;;  %s1062_s23 = sadd.s32 4294967294, %s1563_s21   ;;  %s1563_s21 = sphi %s1611_s21, %s2089_s21   ;;  %s1559_s20 = sphi %s1609_s20, %s2088_s20   ;;  %s1555_s19 = sphi %s1607_s19, %s2087_s19   ;;  %s1551_s18 = sphi %s1605_s18, %s2086_s18  }
   0x7   : > { %p42_p0 = scmp.ne.s32.totalorder %s1555_s19, %s1551_s18  ;;  %p2070_p1 = scmp.eq.s32.totalorder %s1626_s22, 0 }
   0x8   : > { %p156_p3 = scmp.eq.s32.totalorder %s1062_s23, 1  ;;  %p1063_p5 = scmp.ge.s32.totalorder %s1563_s21, 1 }
   0x9   : > { %p1635_p4 = por %p2070_p1, %p42_p0  ;;  %p163_p7 = scmp.lt.s32.totalorder %s1563_s21, 3 }
   0xa   : > { %p1640_p6 = por %p156_p3, %p42_p0  ;;  %s1565_s27 = smov [#allocation5]  }
   0xb   : > { %s2073_s24 = scalar_select %p1635_p4, 1, 0 }
   0xc   : > { %s2074_s25 = scalar_select %p1640_p6, 1, 0 }
   0xd   : > { %p1645_p8 = pnand %p1063_p5, %p163_p7  ;;  %s175_s28 = sshll.u32 %s1565_s27, 4  ;;  %s1649_s28 = int_to_ptr.vmem [resolvable:$true] %s175_s28 }
   0xe   : > { %s1566_s30 = smov [#allocation7]   ;;  %s1407_s9 = scalar_lea.hbm %s2065_s1, 2048 }
   0xf   : > { %p1250_p9 = pneg %p1645_p8  ;;  %s191_s6 = sshll.u32 %s1566_s30, 4  ;;  %s1660_s6 = int_to_ptr.vmem [resolvable:$true] %s191_s6 }
  0x10   : > { %p1408_p12 = scmp.ne.s32.totalorder %s2065_s1, %s1407_s9  ;;  %p1414_p5 = scmp.lt.u32.totalorder %s1407_s9, %s2065_s1 }
  0x11   : > { %p1656_p11 = pnand %p1250_p9, %p2070_p1 }
  0x13   : > { %p1409_p13 = pneg %p1656_p11 }
  0x15   : > { %p1410_p0 = pnand %p1409_p13, %p1408_p12 }
  0x17   : > { %p1411_p3 = pneg %p1410_p0 }
  0x19   : > { %p1416_p7 = pnand %p1414_p5, %p1411_p3 }
  0x1b   : > { %1419 = shalt.err (!%p1416_p7)
}
  0x1c   : > { %s1420_s14 = scalar_lea.vmem %s1649_s28, 2048  ;;  %p1428_p2 = scmp.lt.s32.totalorder %s1649_s28, %s1649_s28 }
  0x1d   : > { %p1421_p9 = scmp.ne.s32.totalorder %s1649_s28, %s1420_s14  ;;  %p1429_p12 = scmp.lt.s32.totalorder %s1420_s14, %s1420_s14 }
  0x1f   : > { %p1423_p10 = pnand %p1421_p9, %p1409_p13  ;;  %p1430_p0 = por %p1429_p12, %p1428_p2 }
  0x21   : > { %p1424_p1 = pneg %p1423_p10 }
  0x23   : > { %p1431_p6 = pnand %p1430_p0, %p1424_p1 }
  0x25   : > { %1434 = shalt.err (!%p1431_p6)
}
  0x26   : > { %s1567_s15 = smov 64   ;;  %s1568_s16 = smov 4  }
  0x27   : > { %1253 = dma.hbm_to_vmem [thread:$0]  (!%p1656_p11), %s2065_s1, 2048, %s1649_s28, [#allocation6], %s1567_s15, %s1567_s15, %s1568_s16  }
  0x28   : > { %s1435_s7 = scalar_lea.hbm %s2067_s3, 1024 }
  0x29   : > { %p1436_p2 = scmp.ne.s32.totalorder %s2067_s3, %s1435_s7  ;;  %p1442_p10 = scmp.lt.u32.totalorder %s1435_s7, %s2067_s3 }
  0x2b   : > { %p1438_p1 = pnand %p1436_p2, %p1409_p13 }
  0x2d   : > { %p1439_p6 = pneg %p1438_p1 }
  0x2f   : > { %p1444_p3 = pnand %p1442_p10, %p1439_p6 }
  0x31   : > { %1447 = shalt.err (!%p1444_p3)
}
  0x32   : > { %s1448_s28 = scalar_lea.vmem %s1660_s6, 1024  ;;  %p1456_p12 = scmp.lt.s32.totalorder %s1660_s6, %s1660_s6 }
  0x33   : > { %p1449_p5 = scmp.ne.s32.totalorder %s1660_s6, %s1448_s28  ;;  %p1457_p0 = scmp.lt.s32.totalorder %s1448_s28, %s1448_s28 }
  0x35   : > { %p1451_p7 = pnand %p1449_p5, %p1409_p13  ;;  %p1458_p2 = por %p1457_p0, %p1456_p12 }
  0x37   : > { %p1452_p9 = pneg %p1451_p7 }
  0x39   : > { %p1459_p1 = pnand %p1458_p2, %p1452_p9 }
  0x3b   : > { %1462 = shalt.err (!%p1459_p1)
}
  0x3c   : > { %1256 = dma.hbm_to_vmem [thread:$0]  (!%p1656_p11), %s2067_s3, 1024, %s1660_s6, [#allocation6], %s1567_s15, %s1567_s15, %s1568_s16  }
  0x3d   : > { %s1715_s14 = sadd.s32 1, %s1563_s21   ;;  %s29_s29 = sadd.s32 1, %s1559_s20 }
  0x3e   : > { %s26_s17 = ssub.s32 %s1563_s21, %s1715_s14  ;;  %p36_p13 = scmp.ne.s32.totalorder %s1559_s20, %s1555_s19 }
  0x3f   : > { %p27_p6 = scmp.eq.s32.totalorder %s26_s17, 0  ;;  %p37_p10 = scmp.eq.s32.totalorder %s1563_s21, 0 }
  0x40   : > { %p2077_p3 = scmp.eq.s32.totalorder %s1626_s22, 1  ;;  %p1267_p7 = scmp.lt.s32.totalorder %s1563_s21, 2 }
  0x41   : > { %s1731_s27 = scalar_select %p27_p6, %s1559_s20, %s29_s29  }
  0x42   : > { %p1725_p5 = por %p2077_p3, %p36_p13  ;;  %p38_p9 = por %p37_p10, %p36_p13 }
  0x43   : > { %s208_s30 = sand.u32 1, %s1559_s20   ;;  %s1124_s6 = sshll.u32 %s1563_s21, 11 }
  0x44   : > { %s2078_s23 = scalar_select %p1725_p5, 1, 0 }
  0x45   : > { %s1067_s7 = sshll.u32 %s208_s30, 7  ;;  %s1738_s8 = scalar_lea.hbm %s2064_s0, %s1124_s6 }
  0x46   : > { %s212_s9 = scalar_lea.vmem [#allocation2], %s1067_s7  ;;  %p1742_p11 = pnand %p1267_p7, %p38_p9 }
  0x47   : > { %s220_s10 = sshll.u32 %s212_s9, 4  ;;  %s1746_s28 = scalar_lea.sflag [#allocation3], %s208_s30  ;;  %s1740_s10 = int_to_ptr.vmem [resolvable:$true] %s220_s10 }
  0x48   : > { %s1463_s12 = scalar_lea.hbm %s1738_s8, 2048  ;;  %p1465_p0 = pneg %p1742_p11 }
  0x49   : > { %p1464_p12 = scmp.ne.s32.totalorder %s1738_s8, %s1463_s12  ;;  %s1468_s17 = scalar_lea.hbm %s2064_s0, 4096 }
  0x4a   : > { %p1469_p13 = scmp.lt.u32.totalorder %s1738_s8, %s2064_s0  ;;  %p1470_p6 = scmp.lt.u32.totalorder %s1468_s17, %s1463_s12 }
  0x4b   : > { %p1466_p2 = pnand %p1465_p0, %p1464_p12  ;;  %p1472_p3 = scmp.lt.u32.totalorder %s1463_s12, %s1738_s8 }
  0x4c   : > { %p1471_p10 = por %p1470_p6, %p1469_p13 }
  0x4d   : > { %p1467_p1 = pneg %p1466_p2 }
  0x4e   : > { %p1473_p7 = por %p1472_p3, %p1471_p10 }
  0x50   : > { %p1474_p9 = pnand %p1473_p7, %p1467_p1 }
  0x52   : > { %1477 = shalt.err (!%p1474_p9)
}
  0x53   : > { %s1478_s30 = scalar_lea.vmem %s1740_s10, 2048  ;;  %s1569_s15 = smov [#allocation2]  }
  0x54   : > { %p1479_p12 = scmp.ne.s32.totalorder %s1740_s10, %s1478_s30  ;;  %s1483_s16 = sshll.u32 %s1569_s15, 4  ;;  %s1484_s16 = int_to_ptr.vmem [resolvable:$false] %s1483_s16 }
  0x55   : > { %s1485_s9 = scalar_lea.vmem %s1484_s16, 4096  ;;  %p1486_p4 = scmp.lt.s32.totalorder %s1740_s10, %s1484_s16 }
  0x56   : > { %p1481_p2 = pnand %p1479_p12, %p1465_p0  ;;  %p1487_p13 = scmp.lt.s32.totalorder %s1485_s9, %s1478_s30 }
  0x58   : > { %p1482_p5 = pneg %p1481_p2  ;;  %p1488_p6 = por %p1487_p13, %p1486_p4 }
  0x5a   : > { %p1489_p10 = pnand %p1488_p6, %p1482_p5 }
  0x5c   : > { %1492 = shalt.err (!%p1489_p10)
}
  0x5d   : > { %s1570_s12 = smov 128   ;;  %s1571_s13 = smov 8  }
  0x5e   : > { %1260 = dma.hbm_to_vmem [thread:$0]  (!%p1742_p11), %s1738_s8, 2048, %s1740_s10, %s1746_s28, %s1570_s12, %s1570_s12, %s1571_s13  }
  0x5f   : > { %232 = sbr.rel (%p1645_p8) target bundleno = 966 (0x3c6), region = 40  ;;  %s1777_s29 = sand.u32 (!%p1645_p8), 1, %s1555_s19  }
  0x60   : > { %s1072_s17 = sshll.u32 (!%p1645_p8), %s1777_s29, 7  ;;  %s235_s7 = scalar_lea.sflag (!%p1645_p8), [#allocation3], %s1777_s29 }
  0x61   : > { %s1783_s6 = scalar_lea.vmem (!%p1645_p8), [#allocation2], %s1072_s17  ;;  %p2080_p4 = scmp.ne.s32.totalorder (!%p1645_p8), %s2073_s24, 0 }
  0x66   : > { %1538 = dma.done.wait (%p2080_p4), %s235_s7, 2048  }
  0x67   : > { %1540 = vsyncadd (%p2080_p4), %s235_s7, 4294965248  ;;  %p2081_p5 = scmp.eq.s32.totalorder %s1626_s22, 0 }
  0x69   : > { %1542 = dma.done.wait (%p2081_p5), [#allocation6], 3072   ;;  %p2082_p8 = pmov %p2081_p5 }
  0x6a   : > { %v1311_v0 = vld [vmem:[#allocation5 + $0x40] sm:$0xff]   ;;  %v1313_v2 = vld [vmem:[#allocation5 + $0x48] sm:$0xff]   ;;  %v1315_v4 = vld [vmem:[#allocation5 + $0x50] sm:$0xff]   ;;  %s1995_s11 = scalar_lea.vmem [#allocation8], %s1072_s17  ;;  %s1125_s28 = sshll.u32 %s1626_s22, 11 }
  0x6b   : > { %1544 = vsyncadd (%p2082_p8), [#allocation6], 4294964224  ;;  %v1312_v1 = vld [vmem:[#allocation5] sm:$0xff]   ;;  %1126 = vmatprep.subr.bf16.mxu0 %v1311_v0  ;;  %v1314_v3 = vld [vmem:[#allocation5 + $0x8] sm:$0xff]   ;;  %s970_s30 = sshll.u32 %s1995_s11, 4  ;;  %s2015_s9 = scalar_lea.hbm %s2069_s5, %s1125_s28  ;;  %s2017_s30 = int_to_ptr.vmem [resolvable:$true] %s970_s30 }
  0x6c   : > { %1127 = vmatpush3.bf16.msra.mxu0 %v1312_v1  ;;  %v1316_v5 = vld [vmem:[#allocation5 + $0x10] sm:$0xff]   ;;  %v1317_v6 = vld [vmem:[#allocation5 + $0x58] sm:$0xff]   ;;  %v1319_v8 = vld [vmem:[#allocation5 + $0x60] sm:$0xff]   ;;  %s957_s22 = scalar_lea.sflag [#allocation4], %s1777_s29  ;;  %s1493_s12 = scalar_lea.vmem %s2017_s30, 2048 }
  0x6d   : > { %1128 = vmatprep.subr.bf16.mxu0 %v1313_v2  ;;  %v1318_v7 = vld [vmem:[#allocation5 + $0x18] sm:$0xff]   ;;  %v1320_v9 = vld [vmem:[#allocation5 + $0x20] sm:$0xff]   ;;  %v1321_v10 = vld [vmem:[#allocation5 + $0x68] sm:$0xff]   ;;  %p1494_p11 = scmp.ne.s32.totalorder %s2017_s30, %s1493_s12  ;;  %p2083_p0 = scmp.ne.s32.totalorder %s2078_s23, 0 }
  0x6e   : > { %v1329_v11 = vld [vmem:[%s1783_s6 + $0x4] ss:$8 sps:$4 sm:$0xff]   ;;  %v1323_v13 = vld [vmem:[#allocation5 + $0x70] sm:$0xff]   ;;  %v1325_v15 = vld [vmem:[#allocation5 + $0x78] sm:$0xff]   ;;  %s1572_s13 = smov [#allocation8]  }
  0x6f   : > { %v1322_v12 = vld [vmem:[#allocation5 + $0x28] sm:$0xff]   ;;  %539 = vmatprep.mubr.bf16.mxu0 %v1329_v11  ;;  %v1324_v14 = vld [vmem:[#allocation5 + $0x30] sm:$0xff]   ;;  %v1326_v16 = vld [vmem:[#allocation5 + $0x38] sm:$0xff]   ;;  %p1495_p1 = pnand %p1494_p11, %p2083_p0  ;;  %s1497_s17 = sshll.u32 %s1572_s13, 4  ;;  %s1498_s17 = int_to_ptr.vmem [resolvable:$false] %s1497_s17 }
  0x70   : > { %1129 = vmatpush3.bf16.msra.mxu0 %v1314_v3  ;;  %v1327_v17 = vld [vmem:[%s1783_s6] ss:$8 sps:$4 sm:$0xff]   ;;  %v1330_v18 = vld [vmem:[%s1783_s6 + $0x14] ss:$8 sps:$4 sm:$0xff]   ;;  %v1332_v19 = vld [vmem:[%s1783_s6 + $0x10] ss:$8 sps:$4 sm:$0xff]   ;;  %p1500_p7 = scmp.lt.s32.totalorder %s2017_s30, %s1498_s17 }
  0x71   : > { %1130 = vmatprep.subr.bf16.mxu0 %v1315_v4  ;;  %v1333_v20 = vld [vmem:[%s1783_s6 + $0x24] ss:$8 sps:$4 sm:$0xff]   ;;  %v1335_v21 = vld [vmem:[%s1783_s6 + $0x20] ss:$8 sps:$4 sm:$0xff]   ;;  %v1336_v22 = vld [vmem:[%s1783_s6 + $0x34] ss:$8 sps:$4 sm:$0xff]   ;;  %p1496_p3 = pneg %p1495_p1 }
  0x72   : > { %v1338_v23 = vld [vmem:[%s1783_s6 + $0x30] ss:$8 sps:$4 sm:$0xff]   ;;  %v1339_v24 = vld [vmem:[%s1783_s6 + $0x44] ss:$8 sps:$4 sm:$0xff]   ;;  %v1341_v25 = vld [vmem:[%s1783_s6 + $0x40] ss:$8 sps:$4 sm:$0xff]  }
  0x73   : > { %v1342_v26 = vld [vmem:[%s1783_s6 + $0x54] ss:$8 sps:$4 sm:$0xff]   ;;  %v1344_v27 = vld [vmem:[%s1783_s6 + $0x50] ss:$8 sps:$4 sm:$0xff]   ;;  %v1345_v28 = vld [vmem:[%s1783_s6 + $0x64] ss:$8 sps:$4 sm:$0xff]  }
  0x74   : > { %1131 = vmatpush3.bf16.msra.mxu0 %v1316_v5  ;;  %v1347_v29 = vld [vmem:[%s1783_s6 + $0x60] ss:$8 sps:$4 sm:$0xff]   ;;  %v1348_v30 = vld [vmem:[%s1783_s6 + $0x74] ss:$8 sps:$4 sm:$0xff]   ;;  %v1350_v31 = vld [vmem:[%s1783_s6 + $0x70] ss:$8 sps:$4 sm:$0xff]  }
  0x75   : > { %1132 = vmatprep.subr.bf16.mxu0 %v1317_v6  ;;  %v1812_v34 = vld [vmem:[%s2066_s2] ss:$0 sm:$0xff]  ;;  %s1499_s7 = scalar_lea.vmem %s1498_s17, 4096 }
  0x76   : > { %p1501_p9 = scmp.lt.s32.totalorder %s1499_s7, %s1493_s12 }
  0x78   : > { %1133 = vmatpush3.bf16.msra.mxu0 %v1318_v7  ;;  %p1502_p12 = por %p1501_p9, %p1500_p7 }
  0x79   : > { %1134 = vmatprep.subr.bf16.mxu0 %v1319_v8 }
  0x7a   : > { %p1503_p2 = pnand %p1502_p12, %p1496_p3 }
  0x7c   : > { %1135 = vmatpush3.bf16.msra.mxu0 %v1320_v9 }
  0x7d   : > { %1136 = vmatprep.subr.bf16.mxu0 %v1321_v10 }
  0x80   : > { %1137 = vmatpush3.bf16.msra.mxu0 %v1322_v12 }
  0x81   : > { %1138 = vmatprep.subr.bf16.mxu0 %v1323_v13 }
  0x84   : > { %1139 = vmatpush3.bf16.msra.mxu0 %v1324_v14 }
  0x85   : > { %1140 = vmatprep.subr.bf16.mxu0 %v1325_v15 }
  0x88   : > { %1141 = vmatpush3.bf16.msra.mxu0 %v1326_v16 }
  0x8b   : > { %540 = vmatmul.mubr.bf16.vlgmr.msra.gmra.mrb[0].mxu0 %v1327_v17 }
  0x8c   : > { %547 = vmatprep.mubr.bf16.mxu0 %v1330_v18 }
  0x93   : > { %548 = vmatmul.mubr.bf16.gmra.mrb[4].mxu0 %v1332_v19 }
  0x94   : > { %555 = vmatprep.mubr.bf16.mxu0 %v1333_v20 }
  0x9b   : > { %556 = vmatmul.mubr.bf16.gmra.mrb[8].mxu0 %v1335_v21 }
  0x9c   : > { %563 = vmatprep.mubr.bf16.mxu0 %v1336_v22 }
  0xa3   : > { %564 = vmatmul.mubr.bf16.gmra.mrb[12].mxu0 %v1338_v23 }
  0xa4   : > { %571 = vmatprep.mubr.bf16.mxu0 %v1339_v24 }
  0xab   : > { %572 = vmatmul.mubr.bf16.gmra.mrb[16].mxu0 %v1341_v25 }
  0xac   : > { %579 = vmatprep.mubr.bf16.mxu0 %v1342_v26 }
  0xb3   : > { %580 = vmatmul.mubr.bf16.gmra.mrb[20].mxu0 %v1344_v27 }
  0xb4   : > { %587 = vmatprep.mubr.bf16.mxu0 %v1345_v28 }
  0xbb   : > { %588 = vmatmul.mubr.bf16.gmra.mrb[24].mxu0 %v1347_v29 }
  0xbc   : > { %595 = vmatprep.mubr.bf16.mxu0 %v1348_v30 }
  0xc3   : > { %596 = vmatmul.mubr.bf16.gmra.mrb[28].mxu0 %v1350_v31 }
 0x15e   : > { %v1142_v32 = vpop.f32.mrb[0].mxu0 }
 0x15f   : > { %v1143_v33 = vpop.f32.mrb[1].mxu0 }
 0x160   : > { %v1144_v35 = vadd.f32 %v1143_v33, %v1142_v32  ;;  %v1145_v36 = vpop.f32.mrb[2].mxu0  ;;  %v1351_v33 = vld [vmem:[#allocation7] sm:$0xff]  }
 0x161   : > { %v1146_v37 = vpop.f32.mrb[3].mxu0  ;;  %1206 = vmatprep.subr.bf16.mxu1 %v1351_v33 }
 0x162   : > { %v1147_v38 = vadd.f32 %v1146_v37, %v1145_v36  ;;  %v1815_v39 = vadd.f32 %v1144_v35, %v1812_v34  ;;  %v1352_v35 = vld [vmem:[#allocation7 + $0x8] sm:$0xff]   ;;  %1207 = vmatpush3.bf16.msra.mxu1 %v1351_v33  ;;  %v1353_v36 = vld [vmem:[#allocation7 + $0x10] sm:$0xff]  }
 0x163   : > { %1208 = vmatprep.subr.bf16.mxu1 %v1352_v35 }
 0x164   : > { %604 = vmax.xlane.f32.xlu0 %v1815_v39  ;;  %v1819_v41 = vadd.f32 %v1147_v38, %v1812_v34 }
 0x166   : > { %v1148_v40 = vpop.f32.mrb[4].mxu0  ;;  %1209 = vmatpush3.bf16.msra.mxu1 %v1352_v35 }
 0x167   : > { %v1149_v42 = vpop.f32.mrb[5].mxu0  ;;  %1210 = vmatprep.subr.bf16.mxu1 %v1353_v36 }
 0x168   : > { %v1150_v43 = vadd.f32 %v1149_v42, %v1148_v40  ;;  %v1151_v44 = vpop.f32.mrb[6].mxu0  ;;  %606 = vmax.xlane.f32.xlu0 %v1819_v41 }
 0x169   : > { %v1152_v45 = vpop.f32.mrb[7].mxu0 }
 0x16a   : > { %v1153_v46 = vadd.f32 %v1152_v45, %v1151_v44  ;;  %v1823_v47 = vadd.f32 %v1150_v43, %v1812_v34  ;;  %1211 = vmatpush3.bf16.msra.mxu1 %v1353_v36  ;;  %v1357_v36 = vld [vmem:[#allocation7 + $0x30] sm:$0xff]  }
 0x16c   : > { %608 = vmax.xlane.f32.xlu1 %v1823_v47  ;;  %v1827_v49 = vadd.f32 %v1153_v46, %v1812_v34 }
 0x16e   : > { %v1154_v48 = vpop.f32.mrb[8].mxu0 }
 0x16f   : > { %v1155_v50 = vpop.f32.mrb[9].mxu0 }
 0x170   : > { %v1156_v51 = vadd.f32 %v1155_v50, %v1154_v48  ;;  %v1157_v52 = vpop.f32.mrb[10].mxu0  ;;  %610 = vmax.xlane.f32.xlu1 %v1827_v49 }
 0x171   : > { %v1158_v53 = vpop.f32.mrb[11].mxu0 }
 0x172   : > { %v1159_v54 = vadd.f32 %v1158_v53, %v1157_v52  ;;  %v1831_v55 = vadd.f32 %v1156_v51, %v1812_v34 }
 0x174   : > { %612 = vmax.xlane.f32.xlu0 %v1831_v55  ;;  %v1835_v56 = vadd.f32 %v1159_v54, %v1812_v34 }
 0x176   : > { %v1160_v57 = vpop.f32.mrb[12].mxu0  ;;  %614 = vmax.xlane.f32.xlu1 %v1835_v56 }
 0x177   : > { %v1161_v58 = vpop.f32.mrb[13].mxu0 }
 0x178   : > { %v1162_v59 = vadd.f32 %v1161_v58, %v1160_v57  ;;  %v1163_v60 = vpop.f32.mrb[14].mxu0 }
 0x179   : > { %v1164_v61 = vpop.f32.mrb[15].mxu0 }
 0x17a   : > { %v1165_v62 = vadd.f32 %v1164_v61, %v1163_v60  ;;  %v1839_v63 = vadd.f32 %v1162_v59, %v1812_v34 }
 0x17c   : > { %616 = vmax.xlane.f32.xlu0 %v1839_v63  ;;  %v1843_v0 = vadd.f32 %v1165_v62, %v1812_v34 }
 0x17e   : > { %v1166_v1 = vpop.f32.mrb[16].mxu0  ;;  %618 = vmax.xlane.f32.xlu1 %v1843_v0 }
 0x17f   : > { %v1167_v2 = vpop.f32.mrb[17].mxu0 }
 0x180   : > { %v1168_v3 = vadd.f32 %v1167_v2, %v1166_v1  ;;  %v1169_v4 = vpop.f32.mrb[18].mxu0 }
 0x181   : > { %v1170_v5 = vpop.f32.mrb[19].mxu0 }
 0x182   : > { %v1171_v6 = vadd.f32 %v1170_v5, %v1169_v4  ;;  %v1847_v7 = vadd.f32 %v1168_v3, %v1812_v34 }
 0x184   : > { %620 = vmax.xlane.f32.xlu0 %v1847_v7  ;;  %v1851_v8 = vadd.f32 %v1171_v6, %v1812_v34 }
 0x186   : > { %v1172_v9 = vpop.f32.mrb[20].mxu0  ;;  %622 = vmax.xlane.f32.xlu1 %v1851_v8 }
 0x187   : > { %v1173_v10 = vpop.f32.mrb[21].mxu0 }
 0x188   : > { %v1174_v11 = vadd.f32 %v1173_v10, %v1172_v9  ;;  %v1175_v12 = vpop.f32.mrb[22].mxu0 }
 0x189   : > { %v1176_v13 = vpop.f32.mrb[23].mxu0 }
 0x18a   : > { %v1177_v14 = vadd.f32 %v1176_v13, %v1175_v12  ;;  %v1855_v15 = vadd.f32 %v1174_v11, %v1812_v34 }
 0x18c   : > { %624 = vmax.xlane.f32.xlu0 %v1855_v15  ;;  %v1859_v16 = vadd.f32 %v1177_v14, %v1812_v34  ;;  %v1354_v14 = vld [vmem:[#allocation7 + $0x18] sm:$0xff]  }
 0x18d   : > { %1212 = vmatprep.subr.bf16.mxu1 %v1354_v14 }
 0x18e   : > { %v1178_v17 = vpop.f32.mrb[24].mxu0  ;;  %626 = vmax.xlane.f32.xlu1 %v1859_v16  ;;  %1213 = vmatpush3.bf16.msra.mxu1 %v1354_v14 }
 0x18f   : > { %v1179_v18 = vpop.f32.mrb[25].mxu0 }
 0x190   : > { %v1180_v19 = vadd.f32 %v1179_v18, %v1178_v17  ;;  %v1181_v20 = vpop.f32.mrb[26].mxu0  ;;  %v1355_v17 = vld [vmem:[#allocation7 + $0x20] sm:$0xff]  }
 0x191   : > { %v1182_v21 = vpop.f32.mrb[27].mxu0  ;;  %1214 = vmatprep.subr.bf16.mxu1 %v1355_v17 }
 0x192   : > { %v1183_v22 = vadd.f32 %v1182_v21, %v1181_v20  ;;  %v1863_v23 = vadd.f32 %v1180_v19, %v1812_v34  ;;  %1215 = vmatpush3.bf16.msra.mxu1 %v1355_v17 }
 0x194   : > { %628 = vmax.xlane.f32.xlu0 %v1863_v23  ;;  %v1867_v24 = vadd.f32 %v1183_v22, %v1812_v34 }
 0x196   : > { %v1184_v25 = vpop.f32.mrb[28].mxu0  ;;  %630 = vmax.xlane.f32.xlu1 %v1867_v24 }
 0x197   : > { %v1185_v26 = vpop.f32.mrb[29].mxu0 }
 0x198   : > { %v1186_v27 = vadd.f32 %v1185_v26, %v1184_v25  ;;  %v1187_v28 = vpop.f32.mrb[30].mxu0 }
 0x199   : > { %v1188_v29 = vpop.f32.mrb[31].mxu0 }
 0x19a   : > { %v1189_v30 = vadd.f32 %v1188_v29, %v1187_v28  ;;  %v1871_v31 = vadd.f32 %v1186_v27, %v1812_v34 }
 0x19c   : > { %632 = vmax.xlane.f32.xlu0 %v1871_v31  ;;  %v1875_v32 = vadd.f32 %v1189_v30, %v1812_v34 }
 0x19e   : > { %634 = vmax.xlane.f32.xlu1 %v1875_v32 }
 0x1f1   : > { %v605_v37 = vpop.xlane.xlu0 %604 }
 0x1f2   : > { %v636_v40 = vsub.f32 %v1815_v39, %v605_v37 }
 0x1f5   : > { %v607_v38 = vpop.xlane.xlu0 %606 }
 0x1f6   : > { %v637_v42 = vsub.f32 %v1819_v41, %v607_v38  ;;  %v1358_v38 = vld [vmem:[#allocation7 + $0x38] sm:$0xff]  }
 0x1f8   : > { %v652_v43 = vpack.c.bf16 %v637_v42, %v636_v40 }
 0x1f9   : > { %v609_v34 = vpop.xlane.xlu1 %608 }
 0x1fa   : > { %v661_v44 = vmul.bf16 1069105081, %v652_v43  ;;  %v638_v46 = vsub.f32 %v1823_v47, %v609_v34 }
 0x1fc   : > { %1359 = vpow.bf16 %v661_v44 }
 0x1fd   : > { %v611_v45 = vpop.xlane.xlu1 %610 }
 0x1fe   : > { %v639_v48 = vsub.f32 %v1827_v49, %v611_v45 }
 0x200   : > { %v653_v50 = vpack.c.bf16 %v639_v48, %v638_v46 }
 0x201   : > { %v613_v51 = vpop.xlane.xlu0 %612 }
 0x202   : > { %v664_v52 = vmul.bf16 1069105081, %v653_v50  ;;  %v640_v54 = vsub.f32 %v1831_v55, %v613_v51 }
 0x203   : > { %v615_v53 = vpop.xlane.xlu1 %614 }
 0x204   : > { %1361 = vpow.bf16 %v664_v52  ;;  %v641_v39 = vsub.f32 %v1835_v56, %v615_v53 }
 0x206   : > { %v654_v57 = vpack.c.bf16 %v641_v39, %v640_v54 }
 0x207   : > { %v1884_v41 = vpop.eup %1359 }
 0x208   : > { %v667_v58 = vmul.bf16 1069105081, %v654_v57  ;;  %v685_v59 = vunpack.c.h.bf16 %v1884_v41  ;;  %v684_v60 = vunpack.c.l.bf16 %v1884_v41 }
 0x209   : > { %v617_v47 = vpop.xlane.xlu0 %616 }
 0x20a   : > { %1363 = vpow.bf16 %v667_v58  ;;  %702 = vadd.xlane.f32.xlu1 %v685_v59  ;;  %700 = vadd.xlane.f32.xlu0 %v684_v60  ;;  %v642_v55 = vsub.f32 %v1839_v63, %v617_v47 }
 0x20b   : > { %v619_v49 = vpop.xlane.xlu1 %618 }
 0x20c   : > { %v643_v56 = vsub.f32 %v1843_v0, %v619_v49 }
 0x20e   : > { %v655_v61 = vpack.c.bf16 %v643_v56, %v642_v55 }
 0x20f   : > { %v1894_v62 = vpop.eup %1361 }
 0x210   : > { %v670_v1 = vmul.bf16 1069105081, %v655_v61  ;;  %v687_v2 = vunpack.c.h.bf16 %v1894_v62  ;;  %v686_v3 = vunpack.c.l.bf16 %v1894_v62 }
 0x211   : > { %v621_v4 = vpop.xlane.xlu0 %620 }
 0x212   : > { %1365 = vpow.bf16 %v670_v1  ;;  %706 = vadd.xlane.f32.xlu1 %v687_v2  ;;  %704 = vadd.xlane.f32.xlu0 %v686_v3  ;;  %v644_v63 = vsub.f32 %v1847_v7, %v621_v4 }
 0x213   : > { %v623_v5 = vpop.xlane.xlu1 %622 }
 0x214   : > { %v645_v0 = vsub.f32 %v1851_v8, %v623_v5 }
 0x215   : > { %v1904_v6 = vpop.eup %1363 }
 0x216   : > { %v656_v9 = vpack.c.bf16 %v645_v0, %v644_v63  ;;  %v689_v10 = vunpack.c.h.bf16 %v1904_v6  ;;  %v688_v11 = vunpack.c.l.bf16 %v1904_v6 }
 0x218   : > { %v673_v12 = vmul.bf16 1069105081, %v656_v9  ;;  %710 = vadd.xlane.f32.xlu1 %v689_v10  ;;  %708 = vadd.xlane.f32.xlu0 %v688_v11 }
 0x219   : > { %v625_v13 = vpop.xlane.xlu0 %624 }
 0x21a   : > { %1367 = vpow.bf16 %v673_v12  ;;  %v646_v8 = vsub.f32 %v1855_v15, %v625_v13  ;;  %v1356_v15 = vld [vmem:[#allocation7 + $0x28] sm:$0xff]  }
 0x21b   : > { %v627_v7 = vpop.xlane.xlu1 %626  ;;  %1216 = vmatprep.subr.bf16.mxu1 %v1356_v15 }
 0x21c   : > { %v647_v18 = vsub.f32 %v1859_v16, %v627_v7  ;;  %1217 = vmatpush3.bf16.msra.mxu1 %v1356_v15 }
 0x21d   : > { %v1914_v19 = vpop.eup %1365  ;;  %1218 = vmatprep.subr.bf16.mxu1 %v1357_v36 }
 0x21e   : > { %v657_v20 = vpack.c.bf16 %v647_v18, %v646_v8  ;;  %v691_v21 = vunpack.c.h.bf16 %v1914_v19  ;;  %v690_v22 = vunpack.c.l.bf16 %v1914_v19 }
 0x220   : > { %v676_v25 = vmul.bf16 1069105081, %v657_v20  ;;  %714 = vadd.xlane.f32.xlu1 %v691_v21  ;;  %712 = vadd.xlane.f32.xlu0 %v690_v22 }
 0x221   : > { %v629_v26 = vpop.xlane.xlu0 %628  ;;  %1219 = vmatpush3.bf16.msra.mxu1 %v1357_v36 }
 0x222   : > { %1369 = vpow.bf16 %v676_v25  ;;  %v648_v27 = vsub.f32 %v1863_v23, %v629_v26  ;;  %1220 = vmatprep.subr.bf16.mxu1 %v1358_v38 }
 0x223   : > { %v631_v16 = vpop.xlane.xlu1 %630 }
 0x224   : > { %v649_v28 = vsub.f32 %v1867_v24, %v631_v16 }
 0x225   : > { %v1924_v29 = vpop.eup %1367  ;;  %1221 = vmatpush3.bf16.msra.mxu1 %v1358_v38 }
 0x226   : > { %v658_v30 = vpack.c.bf16 %v649_v28, %v648_v27  ;;  %v693_v33 = vunpack.c.h.bf16 %v1924_v29  ;;  %v692_v35 = vunpack.c.l.bf16 %v1924_v29 }
 0x228   : > { %v679_v37 = vmul.bf16 1069105081, %v658_v30  ;;  %718 = vadd.xlane.f32.xlu1 %v693_v33  ;;  %716 = vadd.xlane.f32.xlu0 %v692_v35 }
 0x229   : > { %v633_v23 = vpop.xlane.xlu0 %632 }
 0x22a   : > { %1371 = vpow.bf16 %v679_v37  ;;  %v650_v40 = vsub.f32 %v1871_v31, %v633_v23 }
 0x22b   : > { %v635_v24 = vpop.xlane.xlu1 %634 }
 0x22c   : > { %v651_v42 = vsub.f32 %v1875_v32, %v635_v24 }
 0x22d   : > { %v1934_v43 = vpop.eup %1369 }
 0x22e   : > { %v659_v34 = vpack.c.bf16 %v651_v42, %v650_v40  ;;  %v695_v44 = vunpack.c.h.bf16 %v1934_v43  ;;  %v694_v45 = vunpack.c.l.bf16 %v1934_v43 }
 0x230   : > { %v682_v46 = vmul.bf16 1069105081, %v659_v34  ;;  %722 = vadd.xlane.f32.xlu1 %v695_v44  ;;  %720 = vadd.xlane.f32.xlu0 %v694_v45 }
 0x232   : > { %1373 = vpow.bf16 %v682_v46 }
 0x235   : > { %v1942_v48 = vpop.eup %1371 }
 0x236   : > { %v697_v31 = vunpack.c.h.bf16 %v1942_v48  ;;  %v696_v32 = vunpack.c.l.bf16 %v1942_v48 }
 0x238   : > { %726 = vadd.xlane.f32.xlu1 %v697_v31  ;;  %724 = vadd.xlane.f32.xlu0 %v696_v32 }
 0x23d   : > { %v1950_v50 = vpop.eup %1373 }
 0x23e   : > { %v699_v51 = vunpack.c.h.bf16 %v1950_v50  ;;  %v698_v52 = vunpack.c.l.bf16 %v1950_v50 }
 0x240   : > { %730 = vadd.xlane.f32.xlu1 %v699_v51  ;;  %728 = vadd.xlane.f32.xlu0 %v698_v52 }
 0x297   : > { %v703_v53 = vpop.xlane.xlu1 %702  ;;  %v701_v54 = vpop.xlane.xlu0 %700 }
 0x298   : > { %1375 = vrcp.f32 %v703_v53 }
 0x299   : > { %1377 = vrcp.f32 %v701_v54 }
 0x29f   : > { %v707_v39 = vpop.xlane.xlu1 %706  ;;  %v705_v57 = vpop.xlane.xlu0 %704 }
 0x2a0   : > { %1379 = vrcp.f32 %v707_v39 }
 0x2a1   : > { %1381 = vrcp.f32 %v705_v57 }
 0x2a2   : > { %v1376_v58 = vpop.eup %1375 }
 0x2a3   : > { %v1378_v47 = vpop.eup %1377  ;;  %v749_v49 = vmul.f32 %v1376_v58, %v685_v59 }
 0x2a4   : > { %v748_v55 = vmul.f32 %v1378_v47, %v684_v60 }
 0x2a5   : > { %v711_v56 = vpop.xlane.xlu1 %710  ;;  %v709_v61 = vpop.xlane.xlu0 %708 }
 0x2a6   : > { %1383 = vrcp.f32 %v711_v56  ;;  %v764_v1 = vpack.c.bf16 %v749_v49, %v748_v55 }
 0x2a7   : > { %1385 = vrcp.f32 %v709_v61 }
 0x2a8   : > { %1222 = vmatprep.mubr.bf16.mxu1 %v764_v1 }
 0x2aa   : > { %v1380_v4 = vpop.eup %1379 }
 0x2ab   : > { %v1382_v5 = vpop.eup %1381  ;;  %v751_v63 = vmul.f32 %v1380_v4, %v687_v2 }
 0x2ac   : > { %v750_v0 = vmul.f32 %v1382_v5, %v686_v3 }
 0x2ad   : > { %v715_v9 = vpop.xlane.xlu1 %714  ;;  %v713_v12 = vpop.xlane.xlu0 %712 }
 0x2ae   : > { %1387 = vrcp.f32 %v715_v9  ;;  %v765_v59 = vpack.c.bf16 %v751_v63, %v750_v0 }
 0x2af   : > { %1389 = vrcp.f32 %v713_v12 }
 0x2b0   : > { %v1384_v41 = vpop.eup %1383  ;;  %1223 = vmatmul.mubr.bf16.vlgmr.msra.gmra.mrb[0].mxu1 %v765_v59 }
 0x2b1   : > { %v1386_v60 = vpop.eup %1385  ;;  %v753_v13 = vmul.f32 %v1384_v41, %v689_v10 }
 0x2b2   : > { %v752_v14 = vmul.f32 %v1386_v60, %v688_v11 }
 0x2b4   : > { %v766_v17 = vpack.c.bf16 %v753_v13, %v752_v14 }
 0x2b5   : > { %v719_v7 = vpop.xlane.xlu1 %718  ;;  %v717_v2 = vpop.xlane.xlu0 %716 }
 0x2b6   : > { %1391 = vrcp.f32 %v719_v7  ;;  %1226 = vmatprep.mubr.bf16.mxu1 %v766_v17 }
 0x2b7   : > { %1393 = vrcp.f32 %v717_v2 }
 0x2b8   : > { %v1388_v62 = vpop.eup %1387 }
 0x2b9   : > { %v1390_v3 = vpop.eup %1389  ;;  %v755_v8 = vmul.f32 %v1388_v62, %v691_v21 }
 0x2ba   : > { %v754_v18 = vmul.f32 %v1390_v3, %v690_v22 }
 0x2bc   : > { %v767_v20 = vpack.c.bf16 %v755_v8, %v754_v18 }
 0x2bd   : > { %v723_v25 = vpop.xlane.xlu1 %722  ;;  %v721_v10 = vpop.xlane.xlu0 %720 }
 0x2be   : > { %1395 = vrcp.f32 %v723_v25  ;;  %1227 = vmatmul.mubr.bf16.gmra.mrb[4].mxu1 %v767_v20 }
 0x2bf   : > { %1397 = vrcp.f32 %v721_v10 }
 0x2c0   : > { %v1392_v6 = vpop.eup %1391 }
 0x2c1   : > { %v1394_v11 = vpop.eup %1393  ;;  %v757_v26 = vmul.f32 %v1392_v6, %v693_v33 }
 0x2c2   : > { %v756_v15 = vmul.f32 %v1394_v11, %v692_v35 }
 0x2c4   : > { %v768_v16 = vpack.c.bf16 %v757_v26, %v756_v15 }
 0x2c5   : > { %v727_v27 = vpop.xlane.xlu1 %726  ;;  %v725_v21 = vpop.xlane.xlu0 %724 }
 0x2c6   : > { %1399 = vrcp.f32 %v727_v27  ;;  %1230 = vmatprep.mubr.bf16.mxu1 %v768_v16 }
 0x2c7   : > { %1401 = vrcp.f32 %v725_v21 }
 0x2c8   : > { %v1396_v19 = vpop.eup %1395 }
 0x2c9   : > { %v1398_v22 = vpop.eup %1397  ;;  %v759_v28 = vmul.f32 %v1396_v19, %v695_v44 }
 0x2ca   : > { %v758_v30 = vmul.f32 %v1398_v22, %v694_v45  ;;  %v1109_v45 = vld [vmem:[%s2068_s4] ss:$0 sm:$0xff] }
 0x2cc   : > { %v769_v36 = vpack.c.bf16 %v759_v28, %v758_v30 }
 0x2cd   : > { %v731_v37 = vpop.xlane.xlu1 %730  ;;  %v729_v33 = vpop.xlane.xlu0 %728 }
 0x2ce   : > { %1403 = vrcp.f32 %v731_v37  ;;  %1231 = vmatmul.mubr.bf16.gmra.mrb[8].mxu1 %v769_v36 }
 0x2cf   : > { %1405 = vrcp.f32 %v729_v33 }
 0x2d0   : > { %v1400_v29 = vpop.eup %1399 }
 0x2d1   : > { %v1402_v35 = vpop.eup %1401  ;;  %v761_v38 = vmul.f32 %v1400_v29, %v697_v31 }
 0x2d2   : > { %v760_v23 = vmul.f32 %v1402_v35, %v696_v32 }
 0x2d4   : > { %v770_v24 = vpack.c.bf16 %v761_v38, %v760_v23 }
 0x2d6   : > { %1234 = vmatprep.mubr.bf16.mxu1 %v770_v24 }
 0x2d8   : > { %v1404_v40 = vpop.eup %1403 }
 0x2d9   : > { %v1406_v42 = vpop.eup %1405  ;;  %v763_v43 = vmul.f32 %v1404_v40, %v699_v51 }
 0x2da   : > { %v762_v34 = vmul.f32 %v1406_v42, %v698_v52 }
 0x2dc   : > { %v771_v44 = vpack.c.bf16 %v763_v43, %v762_v34 }
 0x2de   : > { %1235 = vmatmul.mubr.bf16.gmra.mrb[12].mxu1 %v771_v44 }
 0x383   : > { %v1224_v46 = vpop.f32.mrb[0].mxu1 }
 0x384   : > { %v886_v48 = vadd.f32 %v1224_v46, %v1109_v45  ;;  %v877_v31 = vpop.f32.mrb[1].mxu1 }
 0x385   : > { %v878_v32 = vadd.f32 %v1109_v45, %v877_v31  ;;  %v1225_v53 = vpop.f32.mrb[2].mxu1 }
 0x386   : > { %942 = vst [vmem:[%s1995_s11 + $0x10] sm:$0xff] %v886_v48  ;;  %v889_v50 = vadd.f32 %v1225_v53, %v1109_v45  ;;  %v880_v51 = vpop.f32.mrb[3].mxu1 }
 0x387   : > { %940 = vst [vmem:[%s1995_s11] sm:$0xff] %v878_v32  ;;  %v881_v52 = vadd.f32 %v1109_v45, %v880_v51 }
 0x388   : > { %943 = vst [vmem:[%s1995_s11 + $0x18] sm:$0xff] %v889_v50 }
 0x389   : > { %941 = vst [vmem:[%s1995_s11 + $0x8] sm:$0xff] %v881_v52 }
 0x391   : > { %v1228_v54 = vpop.f32.mrb[4].mxu1 }
 0x392   : > { %v902_v39 = vadd.f32 %v1228_v54, %v1109_v45  ;;  %v893_v57 = vpop.f32.mrb[5].mxu1 }
 0x393   : > { %v894_v58 = vadd.f32 %v1109_v45, %v893_v57  ;;  %v1229_v47 = vpop.f32.mrb[6].mxu1 }
 0x394   : > { %946 = vst [vmem:[%s1995_s11 + $0x30] sm:$0xff] %v902_v39  ;;  %v905_v49 = vadd.f32 %v1229_v47, %v1109_v45  ;;  %v896_v55 = vpop.f32.mrb[7].mxu1 }
 0x395   : > { %944 = vst [vmem:[%s1995_s11 + $0x20] sm:$0xff] %v894_v58  ;;  %v897_v56 = vadd.f32 %v1109_v45, %v896_v55 }
 0x396   : > { %947 = vst [vmem:[%s1995_s11 + $0x38] sm:$0xff] %v905_v49 }
 0x397   : > { %945 = vst [vmem:[%s1995_s11 + $0x28] sm:$0xff] %v897_v56 }
 0x3a1   : > { %v1232_v61 = vpop.f32.mrb[8].mxu1 }
 0x3a2   : > { %v918_v1 = vadd.f32 %v1232_v61, %v1109_v45  ;;  %v909_v4 = vpop.f32.mrb[9].mxu1 }
 0x3a3   : > { %v910_v5 = vadd.f32 %v1109_v45, %v909_v4  ;;  %v1233_v63 = vpop.f32.mrb[10].mxu1 }
 0x3a4   : > { %950 = vst [vmem:[%s1995_s11 + $0x50] sm:$0xff] %v918_v1  ;;  %v921_v0 = vadd.f32 %v1233_v63, %v1109_v45  ;;  %v912_v9 = vpop.f32.mrb[11].mxu1 }
 0x3a5   : > { %948 = vst [vmem:[%s1995_s11 + $0x40] sm:$0xff] %v910_v5  ;;  %v913_v12 = vadd.f32 %v1109_v45, %v912_v9 }
 0x3a6   : > { %951 = vst [vmem:[%s1995_s11 + $0x58] sm:$0xff] %v921_v0 }
 0x3a7   : > { %949 = vst [vmem:[%s1995_s11 + $0x48] sm:$0xff] %v913_v12 }
 0x3b1   : > { %v1236_v59 = vpop.f32.mrb[12].mxu1 }
 0x3b2   : > { %v934_v41 = vadd.f32 %v1236_v59, %v1109_v45  ;;  %v925_v60 = vpop.f32.mrb[13].mxu1 }
 0x3b3   : > { %v926_v13 = vadd.f32 %v1109_v45, %v925_v60  ;;  %v1237_v14 = vpop.f32.mrb[14].mxu1 }
 0x3b4   : > { %954 = vst [vmem:[%s1995_s11 + $0x70] sm:$0xff] %v934_v41  ;;  %v937_v17 = vadd.f32 %v1237_v14, %v1109_v45  ;;  %v928_v7 = vpop.f32.mrb[15].mxu1 }
 0x3b5   : > { %952 = vst [vmem:[%s1995_s11 + $0x60] sm:$0xff] %v926_v13  ;;  %v929_v2 = vadd.f32 %v1109_v45, %v928_v7 }
 0x3b6   : > { %955 = vst [vmem:[%s1995_s11 + $0x78] sm:$0xff] %v937_v17 }
 0x3b7   : > { %953 = vst [vmem:[%s1995_s11 + $0x68] sm:$0xff] %v929_v2 }
 0x3b8   : > { %1506 = shalt.err (!%p1503_p2)
}
 0x3b9   : > { %s1507_s6 = scalar_lea.hbm %s2015_s9, 2048  ;;  %s1511_s8 = scalar_lea.hbm %s2069_s5, 4096 }
 0x3ba   : > { %p1508_p13 = scmp.ne.s32.totalorder %s2015_s9, %s1507_s6  ;;  %p1512_p4 = scmp.lt.u32.totalorder %s2015_s9, %s2069_s5 }
 0x3bb   : > { %p1513_p5 = scmp.lt.u32.totalorder %s1511_s8, %s1507_s6  ;;  %p1515_p11 = scmp.lt.u32.totalorder %s1507_s6, %s2015_s9 }
 0x3bc   : > { %p1509_p6 = pnand %p1508_p13, %p2083_p0 }
 0x3bd   : > { %p1514_p8 = por %p1513_p5, %p1512_p4 }
 0x3be   : > { %p1510_p10 = pneg %p1509_p6 }
 0x3bf   : > { %p1516_p1 = por %p1515_p11, %p1514_p8 }
 0x3c1   : > { %p1517_p3 = pnand %p1516_p1, %p1510_p10 }
 0x3c3   : > { %1520 = shalt.err (!%p1517_p3)
}
 0x3c4   : > { %s1573_s28 = smov 128   ;;  %s1574_s15 = smov 8  }
 0x3c5   : > { %1248 = dma.vmem_to_hbm [thread:$0]  (%p2083_p0), %s2017_s30, 2048, %s2015_s9, %s957_s22, %s1573_s28, %s1573_s28, %s1574_s15  }
 0x3c6 PF: > { %s985_s16 = sand.u32 1, %s1551_s18   ;;  %p2084_p7 = scmp.ne.s32.totalorder %s2074_s25, 0 }
 0x3c7   : > { %p2085_p9 = scmp.ge.s32.totalorder %s1563_s21, 2  ;;  %s986_s12 = scalar_lea.sflag [#allocation4], %s985_s16 }
 0x3c9   : > { %p1262_p12 = pnand %p2085_p9, %p2084_p7 }
 0x3cb   : > { %1546 = dma.done.wait (!%p1262_p12), %s986_s12, 2048  }
 0x3cc   : > { %1548 = vsyncadd (!%p1262_p12), %s986_s12, 4294965248  ;;  %p19_p2 = scmp.ge.s32.totalorder %s1715_s14, 4   ;;  %s2086_s18 = smov %s1555_s19 }
 0x3cd   : > { %s2087_s19 = smov %s1559_s20  ;;  %s2088_s20 = smov %s1731_s27 }
 0x3ce   : > { %s2089_s21 = smov %s1715_s14  ;;  %21 = sbr.rel (!%p19_p2) target bundleno = 6 (0x6), region = 93 }
 0x3d5   :  { %991 = vsyncpa [#allocation3], 1 }
 0x3d6   :  { %993 = vsyncpa [#allocation3 + $0x1], 1 }
 0x3d7   :  { %994 = vsyncpa [#allocation6], 1 }
 0x3d8   :  { %995 = vsyncpa [#allocation4], 1 }
 0x3d9   :  { %997 = vsyncpa [#allocation4 + $0x1], 1 }

</bundles_post_ra>
